<compile_context>
chip_gen: v5e
topology: v5e:2x2
jax: 0.10.0
libtpu: 0.0.40
codegen_flags: <defaults>
</compile_context>

<pallas_src>
import functools
import math

import jax
import jax.numpy as jnp
from jax import lax
from jax.experimental import pallas as pl
from jax.experimental.pallas import tpu as pltpu

_INV_LN10 = 1.0 / math.log(10.0)
_LANE = 128


def _ce_log10_kernel(logits_ref, labels_ref, o_ref, acc_ref, *,
                     batch, block_cols):
    """One batch tile; batch on lanes, classes on sublanes.

    logits_ref : [C, TB]  native dtype (upcast in-kernel)
    labels_ref : [1, TB]  int32
    o_ref      : [1, 1]   SMEM scalar output (mean loss)
    acc_ref    : [1, TB]  VMEM per-lane running partial sums
    """
    step = pl.program_id(0)

    @pl.when(step == 0)
    def _init():
        acc_ref[...] = jnp.zeros_like(acc_ref)

    x = logits_ref[...].astype(jnp.float32)                    # [C, TB]
    lbl = labels_ref[...]                                       # [1, TB]

    # numerically-stable log-sum-exp over the class (sublane) axis
    m = jnp.max(x, axis=0, keepdims=True)                       # [1, TB]
    s = jnp.sum(jnp.exp(x - m), axis=0, keepdims=True)          # [1, TB]
    lse = m + jnp.log(s)                                        # [1, TB]

    # one-hot gather of the true-class logit (sublane compare + reduce)
    cls = lax.broadcasted_iota(jnp.int32, x.shape, 0)            # [C, TB]
    x_true = jnp.sum(jnp.where(cls == lbl, x, jnp.float32(0.0)),
                     axis=0, keepdims=True)                      # [1, TB]

    # -log10(softmax_y) = (lse - x_y) / ln(10)
    per_sample = (lse - x_true) * jnp.float32(_INV_LN10)         # [1, TB]

    # mask padded batch lanes (select, not multiply, so garbage cannot leak)
    sample = (lax.broadcasted_iota(jnp.int32, per_sample.shape, 1)
              + step * block_cols)
    acc_ref[...] += jnp.where(sample < batch, per_sample, jnp.float32(0.0))

    @pl.when(step == pl.num_programs(0) - 1)
    def _finalize():
        o_ref[0, 0] = jnp.sum(acc_ref[...]) * jnp.float32(1.0 / batch)


def ce_loss_log10(inference, ground_truth, *, block_cols=8192):
    """loss = mean_i( -log10( softmax(inference)_i[ground_truth_i] ) )."""
    b, c = inference.shape

    # batch lies on lanes: tile is a multiple of 128 samples, capped at
    # block_cols; batch is padded up to a multiple of the tile.
    tb = min(block_cols, max(_LANE, ((b + _LANE - 1) // _LANE) * _LANE))
    bp = ((b + tb - 1) // tb) * tb

    # (C, Bp) layout: classes on sublanes, samples on lanes; native dtype.
    logits_t = jnp.zeros((c, bp), inference.dtype).at[:, :b].set(inference.T)
    labels_t = jnp.zeros((1, bp), jnp.int32).at[0, :b].set(
        ground_truth.astype(jnp.int32))

    grid = (bp // tb,)
    kernel = functools.partial(_ce_log10_kernel, batch=b, block_cols=tb)
    dsize = jnp.dtype(inference.dtype).itemsize

    out = pl.pallas_call(
        kernel,
        out_shape=jax.ShapeDtypeStruct((1, 1), jnp.float32),
        grid=grid,
        in_specs=[
            pl.BlockSpec((c, tb), lambda i: (0, i)),   # full class dim per tile
            pl.BlockSpec((1, tb), lambda i: (0, i)),
        ],
        out_specs=pl.BlockSpec(memory_space=pltpu.MemorySpace.SMEM),
        scratch_shapes=[pltpu.VMEM((1, tb), jnp.float32)],
        compiler_params=pltpu.CompilerParams(
            dimension_semantics=("arbitrary",)),       # accumulator across grid
        cost_estimate=pl.CostEstimate(
            flops=8 * bp * c,
            transcendentals=bp * (c + 1),
            bytes_accessed=bp * c * dsize + bp * 4 + 4),
    )(logits_t, labels_t)
    return out[0, 0]


def _ce_loss_log10_reference(inference, ground_truth):
    # plain-JAX transcription of the PyTorch module (naive softmax + log10)
    onehot = jax.nn.one_hot(ground_truth, inference.shape[1], dtype=jnp.float32)
    e = jnp.exp(inference)
    softmax = e / jnp.sum(e, axis=1, keepdims=True)
    loss = -jnp.sum(onehot * (jnp.log(softmax) / jnp.log(10.0)), axis=1)
    return loss.mean()


if __name__ == "__main__":
    key = jax.random.PRNGKey(0)
    k_logits, k_labels = jax.random.split(key)

    batch, num_classes = 2, 10
    inference = jax.random.normal(k_logits, (batch, num_classes), jnp.float32)
    ground_truth = jax.random.randint(k_labels, (batch,), 0, num_classes,
                                      dtype=jnp.int32)

    loss_fn = jax.jit(ce_loss_log10)
    loss = jax.block_until_ready(loss_fn(inference, ground_truth))

    ref = _ce_loss_log10_reference(inference, ground_truth)
    assert loss.shape == (), loss.shape
    assert bool(jnp.isfinite(loss))
    assert bool(jnp.allclose(loss, ref, rtol=1e-5, atol=1e-5)), (loss, ref)
    print("KERNEL_OK")
</pallas_src>

<mosaic_0001>
module attributes {stable_mosaic.version = 11 : i64} {
  func.func @_ce_log10_kernel(%arg0: i32, %arg1: memref<10x128xf32, #tpu.memory_space<vmem>>, %arg2: memref<1x128xi32, #tpu.memory_space<vmem>>, %arg3: memref<1x1xf32, #tpu.memory_space<smem>>, %arg4: memref<1x128xf32, #tpu.memory_space<vmem>>) attributes {dimension_semantics = [#tpu.dimension_semantics<arbitrary>], iteration_bounds = array<i64: 1>, scalar_prefetch = 0 : i64, scratch_operands = 1 : i64, tpu.core_type = #tpu.core_type<tc>, window_params = [{transform_indices = @transform_0, window_bounds = array<i64: 10, 128>}, {transform_indices = @transform_1, window_bounds = array<i64: 1, 128>}, {transform_indices = @transform_2, window_bounds = array<i64: 1, 1>}]} {
    %c0_i32 = arith.constant 0 : i32
    %0 = arith.cmpi eq, %arg0, %c0_i32 : i32
    %1 = arith.extui %0 : i1 to i32
    %c0_i32_0 = arith.constant 0 : i32
    %2 = arith.cmpi ne, %1, %c0_i32_0 : i32
    scf.if %2 {
      %cst_15 = arith.constant 0.000000e+00 : f32
      %38 = vector.broadcast %cst_15 : f32 to vector<1x128xf32>
      %c0_16 = arith.constant 0 : index
      %c0_17 = arith.constant 0 : index
      %39 = vector.load %arg4[%c0_16, %c0_17] : memref<1x128xf32, #tpu.memory_space<vmem>>, vector<1x128xf32>
      tpu.vector_store %arg4[%c0_16, %c0_17], %38 {strides = array<i32>} : memref<1x128xf32, #tpu.memory_space<vmem>>, vector<1x128xf32>,
    } else {
    }
    %c0 = arith.constant 0 : index
    %c0_1 = arith.constant 0 : index
    %3 = vector.load %arg1[%c0, %c0_1] : memref<10x128xf32, #tpu.memory_space<vmem>>, vector<10x128xf32>
    %c0_2 = arith.constant 0 : index
    %c0_3 = arith.constant 0 : index
    %4 = vector.load %arg2[%c0_2, %c0_3] : memref<1x128xi32, #tpu.memory_space<vmem>>, vector<1x128xi32>
    %cst = arith.constant dense<0xFF800000> : vector<128xf32>
    %5 = vector.multi_reduction <maximumf>, %3, %cst [0] : vector<10x128xf32> to vector<128xf32>
    %6 = vector.shape_cast %5 : vector<128xf32> to vector<1x128xf32>
    %7 = vector.broadcast %6 : vector<1x128xf32> to vector<10x128xf32>
    %8 = arith.subf %3, %7 : vector<10x128xf32>
    %9 = math.exp %8 : vector<10x128xf32>
    %cst_4 = arith.constant dense<0.000000e+00> : vector<128xf32>
    %10 = vector.multi_reduction <add>, %9, %cst_4 [0] : vector<10x128xf32> to vector<128xf32>
    %11 = vector.shape_cast %10 : vector<128xf32> to vector<1x128xf32>
    %12 = math.log %11 : vector<1x128xf32>
    %13 = arith.addf %6, %12 : vector<1x128xf32>
    %14 = tpu.iota {dimensions = array<i32: 0>} : vector<10x128xi32>
    %15 = vector.broadcast %4 : vector<1x128xi32> to vector<10x128xi32>
    %16 = arith.cmpi eq, %14, %15 : vector<10x128xi32>
    %cst_5 = arith.constant 0.000000e+00 : f32
    %17 = vector.broadcast %cst_5 : f32 to vector<10x128xf32>
    %18 = arith.select %16, %3, %17 : vector<10x128xi1>, vector<10x128xf32>
    %cst_6 = arith.constant dense<0.000000e+00> : vector<128xf32>
    %19 = vector.multi_reduction <add>, %18, %cst_6 [0] : vector<10x128xf32> to vector<128xf32>
    %20 = vector.shape_cast %19 : vector<128xf32> to vector<1x128xf32>
    %21 = arith.subf %13, %20 : vector<1x128xf32>
    %cst_7 = arith.constant 0.434294492 : f32
    %22 = vector.broadcast %cst_7 : f32 to vector<1x128xf32>
    %23 = arith.mulf %21, %22 : vector<1x128xf32>
    %24 = tpu.iota {dimensions = array<i32: 1>} : vector<1x128xi32>
    %c128_i32 = arith.constant 128 : i32
    %25 = arith.muli %arg0, %c128_i32 : i32
    %26 = vector.broadcast %25 : i32 to vector<1x128xi32>
    %27 = arith.addi %24, %26 : vector<1x128xi32>
    %c0_8 = arith.constant 0 : index
    %c0_9 = arith.constant 0 : index
    %28 = vector.load %arg4[%c0_8, %c0_9] : memref<1x128xf32, #tpu.memory_space<vmem>>, vector<1x128xf32>
    %c2_i32 = arith.constant 2 : i32
    %29 = vector.broadcast %c2_i32 : i32 to vector<1x128xi32>
    %30 = arith.cmpi slt, %27, %29 : vector<1x128xi32>
    %cst_10 = arith.constant 0.000000e+00 : f32
    %31 = vector.broadcast %cst_10 : f32 to vector<1x128xf32>
    %32 = arith.select %30, %23, %31 : vector<1x128xi1>, vector<1x128xf32>
    %33 = arith.addf %28, %32 : vector<1x128xf32>
    %c0_11 = arith.constant 0 : index
    %c0_12 = arith.constant 0 : index
    %34 = vector.load %arg4[%c0_11, %c0_12] : memref<1x128xf32, #tpu.memory_space<vmem>>, vector<1x128xf32>
    tpu.vector_store %arg4[%c0_11, %c0_12], %33 {strides = array<i32>} : memref<1x128xf32, #tpu.memory_space<vmem>>, vector<1x128xf32>,
    %c0_i32_13 = arith.constant 0 : i32
    %35 = arith.cmpi eq, %arg0, %c0_i32_13 : i32
    %36 = arith.extui %35 : i1 to i32
    %c0_i32_14 = arith.constant 0 : i32
    %37 = arith.cmpi ne, %36, %c0_i32_14 : i32
    scf.if %37 {
      %c0_15 = arith.constant 0 : index
      %c0_16 = arith.constant 0 : index
      %38 = vector.load %arg4[%c0_15, %c0_16] : memref<1x128xf32, #tpu.memory_space<vmem>>, vector<1x128xf32>
      %39 = vector.shape_cast %38 : vector<1x128xf32> to vector<1x1x128xf32>
      %cst_17 = arith.constant dense<0.000000e+00> : vector<1xf32>
      %40 = vector.multi_reduction <add>, %39, %cst_17 [1, 2] : vector<1x1x128xf32> to vector<1xf32>
      %41 = vector.shape_cast %40 : vector<1xf32> to vector<1x1x1xf32>
      %42 = vector.extract %41[0, 0, 0] : f32 from vector<1x1x1xf32>
      %cst_18 = arith.constant 5.000000e-01 : f32
      %43 = arith.mulf %42, %cst_18 : f32
      %c0_19 = arith.constant 0 : index
      %c0_20 = arith.constant 0 : index
      %44 = memref.load %arg3[%c0_19, %c0_20] : memref<1x1xf32, #tpu.memory_space<smem>>
      memref.store %43, %arg3[%c0_19, %c0_20] : memref<1x1xf32, #tpu.memory_space<smem>>
    } else {
    }
    return
  }
  func.func @transform_0(%arg0: i32) -> (i32, i32) {
    %c0_i32 = arith.constant 0 : i32
    %c0_i32_0 = arith.constant 0 : i32
    return %c0_i32, %arg0 : i32, i32
  }
  func.func @transform_1(%arg0: i32) -> (i32, i32) {
    %c0_i32 = arith.constant 0 : i32
    %c0_i32_0 = arith.constant 0 : i32
    return %c0_i32, %arg0 : i32, i32
  }
  func.func @transform_2(%arg0: i32) -> (i32, i32) {
    %c0_i32 = arith.constant 0 : i32
    %c0_i32_0 = arith.constant 0 : i32
    %c0_i32_1 = arith.constant 0 : i32
    return %c0_i32, %c0_i32_0 : i32, i32
  }
}

</mosaic_0001>

<bundles_post_ra>
// kernel: ce_loss_log10.1
= control target key start
LH: loop header
LB: loop body
LE: loop exit
PB: predicated region body
PF: predicated region fallthrough
CT: control target
= control target key end

     0   :  { %v132_v2 = vmov 0.0   ;;  %vm20_vm0 = vcmask 1041408   ;;  %s164_s0 = inlined_call_operand.vmem [shape: f32[10,128], index: 0, kind: input, shape index: {}]   ;;  %s165_s1 = inlined_call_operand.vmem [shape: s32[1,128], index: 1, kind: input, shape index: {}]   ;;  %s166_s2 = inlined_call_operand.hbm [shape: f32[1,1], index: 2, kind: output, shape index: {}]  }
   0x1   :  { %v17_v0 = vld [vmem:[%s164_s0] sm:$0xff]  ;;  %v18_v1 = vld [vmem:[%s164_s0 + $0x8] sm:$0x3]  ;;  %16 = vst [vmem:[#allocation2] sm:$0x1] %v132_v2 }
   0x2   :  { %7 = vsyncpa [#allocation4], 0  ;;  %v21_v3 = vsel %vm20_vm0, %v18_v1, -inf  ;;  %v46_v6 = vlaneseq  ;;  %v111_v13 = vld [vmem:[%s165_s1] ss:$0 sm:$0xff]  ;;  %vm78_vm4 = vcmask 1040384  }
   0x3   :  { %v22_v4 = vmax.f32 %v17_v0, %v21_v3  ;;  %s97_s15 = sshll.u32 %s166_s2, 4  ;;  %s133_s18 = smov [#allocation3]   ;;  %s98_s15 = int_to_ptr.hbm [resolvable:$true] %s97_s15 }
   0x4   :  { %v47_v9 = vshrl.u32 %v46_v6, 7  ;;  %v65_v41 = vand.u32 127, %v46_v6 }
   0x5   :  { %v23_v5 = vrot.slane %v22_v4, 4 }
   0x6   :  { %v48_v12 = vadd.s32 8, %v47_v9  ;;  %vm50_vm2 = vcmp.eq.s32.totalorder %v47_v9, %v111_v13  ;;  %vm70_vm3 = vcmp.lt.s32.totalorder %v65_v41, 2 }
   0x7   :  { %v24_v7 = vmax.f32 %v22_v4, %v23_v5  ;;  %v52_v20 = vsel %vm50_vm2, %v17_v0, 0.0 }
   0x8   :  { %vm51_vm1 = vcmp.eq.s32.totalorder %v48_v12, %v111_v13  ;;  %v69_v45 = vld [vmem:[#allocation2] sm:$0x1] }
   0x9   :  { %v25_v8 = vrot.slane %v24_v7, 2  ;;  %v53_v19 = vsel %vm51_vm1, %v18_v1, 0.0 }
   0xa   :  { %v54_v21 = vsel %vm20_vm0, %v53_v19, 0.0 }
   0xb   :  { %v26_v10 = vmax.f32 %v24_v7, %v25_v8  ;;  %v55_v23 = vadd.f32 %v54_v21, %v52_v20 }
   0xd   :  { %v27_v11 = vrot.slane %v26_v10, 1  ;;  %v56_v27 = vrot.slane %v55_v23, 4 }
   0xf   :  { %v28_v14 = vmax.f32 %v26_v10, %v27_v11  ;;  %v57_v30 = vadd.f32 %v56_v27, %v55_v23 }
  0x11   :  { %v29_v15 = vsub.f32 %v17_v0, %v28_v14  ;;  %v30_v16 = vsub.f32 %v18_v1, %v28_v14  ;;  %v58_v33 = vrot.slane %v57_v30, 2 }
  0x13   :  { %v31_v17 = vmul.f32 1.442695, %v29_v15  ;;  %v33_v18 = vmul.f32 1.442695, %v30_v16  ;;  %v59_v36 = vadd.f32 %v58_v33, %v57_v30 }
  0x15   :  { %112 = vpow2.f32 %v31_v17  ;;  %v60_v37 = vrot.slane %v59_v36, 1 }
  0x16   :  { %114 = vpow2.f32 %v33_v18 }
  0x17   :  { %v61_v40 = vadd.f32 %v60_v37, %v59_v36 }
  0x1b   :  { %v113_v22 = vpop.eup %112 }
  0x1c   :  { %v115_v24 = vpop.eup %114 }
  0x1d   :  { %v35_v25 = vsel %vm20_vm0, %v115_v24, 0.0 }
  0x1e   :  { %v36_v26 = vadd.f32 %v113_v22, %v35_v25 }
  0x20   :  { %v37_v28 = vrot.slane %v36_v26, 4 }
  0x22   :  { %v38_v29 = vadd.f32 %v37_v28, %v36_v26 }
  0x24   :  { %v39_v31 = vrot.slane %v38_v29, 2 }
  0x26   :  { %v40_v32 = vadd.f32 %v39_v31, %v38_v29 }
  0x28   :  { %v41_v34 = vrot.slane %v40_v32, 1 }
  0x2a   :  { %v42_v35 = vadd.f32 %v41_v34, %v40_v32 }
  0x2c   :  { %116 = vlog2.f32 %v42_v35 }
  0x32   :  { %v117_v38 = vpop.eup %116 }
  0x33   :  { %v44_v39 = vmul.f32 0.6931472, %v117_v38 }
  0x35   :  { %v45_v42 = vadd.f32 %v44_v39, %v28_v14 }
  0x37   :  { %v62_v43 = vsub.f32 %v45_v42, %v61_v40 }
  0x39   :  { %v63_v44 = vmul.f32 0.4342945, %v62_v43 }
  0x3b   :  { %v71_v46 = vsel %vm70_vm3, %v63_v44, 0.0 }
  0x3c   :  { %v72_v47 = vadd.f32 %v71_v46, %v69_v45 }
  0x3e   :  { %73 = vst [vmem:[#allocation2] sm:$0x1] %v72_v47 }
  0x45   :  { %v77_v48 = vld [vmem:[#allocation2] sm:$0x1] }
  0x46   :  { %v79_v49 = vsel %vm78_vm4, %v77_v48, 0.0 }
  0x47   :  { %80 = vadd.xlane.f32.xlu0 %v79_v49 }
  0xba   :  { %v81_v50 = vpop.xlane.xlu0 %80 }
  0xbb   :  { %v82_v51 = vrot.slane %v81_v50, 4 }
  0xbd   :  { %v83_v52 = vadd.f32 %v82_v51, %v81_v50 }
  0xbf   :  { %v84_v53 = vrot.slane %v83_v52, 2 }
  0xc1   :  { %v85_v54 = vadd.f32 %v84_v53, %v83_v52 }
  0xc3   :  { %v86_v55 = vrot.slane %v85_v54, 1 }
  0xc5   :  { %v87_v56 = vadd.f32 %v86_v55, %v85_v54 }
  0xc7   :  { %107 = vpush %v87_v56 }
  0xf8   :  { %s108_s16 = spop %107 }
  0xf9   :  { %s89_s17 = smul.f32 0.5, %s108_s16 }
  0xfb   :  { %91 = sst [smem:[#allocation3]] %s89_s17 }
  0xfc   :  { %100 = dma.smem_to_hbm %s133_s18, 16, %s98_s15, [#allocation4]  }
  0xfd   :  { %130 = dma.done.wait [#allocation4], 16  }
  0xfe   :  { %131 = vsyncadd [#allocation4], 4294967280 }
  0xff   :  { %105 = sfence }
 0x100   :  { %106 = vsyncpa [#allocation4], 1 }

</bundles_post_ra>
